<compile_context>
chip_gen: v6e
topology: v6e:2x2x1
jax: 0.10.0
libtpu: 0.0.40
codegen_flags: <defaults>
</compile_context>

<pallas_src>
import jax
import jax.numpy as jnp
from jax.experimental import pallas as pl
from jax.experimental.pallas import tpu as pltpu

_SUBLANE = 8


def _round_up(n, m):
    return ((n + m - 1) // m) * m


def _double_stage_kernel(x_ref, w1_ref, b1_ref, w2_ref, b2_ref, s1_ref, s2_ref):
    # fc1 on the MXU with f32 accumulation; bias broadcast-add on the VPU.
    h = jnp.dot(x_ref[...], w1_ref[...], preferred_element_type=jnp.float32)
    h = h + b1_ref[...]
    # Stage 1: logistic on the EUP.
    s1 = jax.nn.sigmoid(h)
    # fc2 consumes the *pre-sigmoid* h (matches the PyTorch forward).  h is dead
    # after this dot, so only s1/s2 stay live across the stores.
    s2 = jnp.dot(h.astype(w2_ref.dtype), w2_ref[...],
                 preferred_element_type=jnp.float32) + b2_ref[...]
    s1_ref[...] = s1.astype(s1_ref.dtype)
    s2_ref[...] = s2.astype(s2_ref.dtype)


def prepare_params(w1, b1, w2, b2):
    """One-time conversion from torch.nn.Linear convention (w: (out, in),
    b: (out,)) to MXU-friendly (in, out) weights and (1, out) biases.
    No feature padding: blocks with full-extent dims are legal, so the kernel
    DMAs exactly the bytes the math needs."""
    return dict(
        w1=jnp.asarray(w1).T,
        b1=jnp.asarray(b1).reshape(1, -1),
        w2=jnp.asarray(w2).T,
        b2=jnp.asarray(b2).reshape(1, -1),
    )


def _tpu_config():
    """(vmem_capacity_bytes, batch-tile cap, force >=2 grid steps) per TPU gen."""
    try:
        kind = jax.devices()[0].device_kind.lower()
    except Exception:
        kind = ""
    if any(tag in kind for tag in ("v4", "v5", "v6")):
        # 128 MiB VMEM, single TensorCore per chip.
        return 128 * 1024 * 1024, 2048, False
    # v7x (or unknown -> be conservative): 64 MiB VMEM per TC, 2 TCs per chip.
    return 64 * 1024 * 1024, 1024, True


def _choose_tm(batch, in_f, out_f, itemsize, tm_cap, vmem_cap, split_for_cores):
    """Largest sublane-aligned batch tile whose working set (double-buffered
    resident weights + double-buffered x/s1/s2 tiles + f32 intermediates) fits
    a VMEM budget with compiler-scratch headroom; on v7x also capped so the
    batch-parallel grid has >= 2 steps (one per TensorCore)."""
    budget = int(vmem_cap * 0.75)
    rows = _round_up(batch, _SUBLANE)
    tm = min(tm_cap, rows)
    if split_for_cores and rows >= 2 * _SUBLANE:
        tm = min(tm, _round_up(pl.cdiv(rows, 2), _SUBLANE))
    tm = _round_up(tm, _SUBLANE)
    weights = 2 * (in_f * out_f + out_f * out_f + 2 * out_f) * itemsize
    while tm > _SUBLANE:
        tiles = 2 * tm * (in_f + 2 * out_f) * itemsize + 2 * tm * out_f * 4
        if weights + tiles <= budget:
            break
        tm = max(_round_up(tm // 2, _SUBLANE), _SUBLANE)
    return tm


def double_stage_regressor(x, params):
    """x: (B, in_features). params: output of prepare_params(). Returns (s1, s2)."""
    w1, b1, w2, b2 = params["w1"], params["b1"], params["w2"], params["b2"]
    B, in_f = x.shape
    assert w1.shape[0] == in_f
    out_f = w1.shape[1]
    itemsize = jnp.dtype(x.dtype).itemsize

    vmem_cap, tm_cap, split_for_cores = _tpu_config()
    tm = _choose_tm(B, in_f, out_f, itemsize, tm_cap, vmem_cap, split_for_cores)
    grid = (pl.cdiv(B, tm),)

    # Scheduler hint: two GEMMs + one logistic per row; exact HBM bytes.
    flops = 2 * B * in_f * out_f + 2 * B * out_f * out_f
    bytes_accessed = itemsize * (x.size + w1.size + b1.size + w2.size + b2.size
                                 + 2 * B * out_f)
    cost = pl.CostEstimate(flops=flops, transcendentals=B * out_f,
                           bytes_accessed=bytes_accessed)

    vmem_need = (2 * (w1.size + w2.size + b1.size + b2.size) * itemsize
                 + 2 * tm * (in_f + 2 * out_f) * itemsize + 2 * tm * out_f * 4)
    vmem_limit = int(min(max(2 * vmem_need, 32 * 1024 * 1024),
                         int(vmem_cap * 0.85)))

    s1, s2 = pl.pallas_call(
        _double_stage_kernel,
        out_shape=(
            jax.ShapeDtypeStruct((B, out_f), x.dtype),
            jax.ShapeDtypeStruct((B, out_f), x.dtype),
        ),
        grid=grid,
        in_specs=[
            pl.BlockSpec((tm, in_f), lambda i: (i, 0)),        # x: streamed tiles
            pl.BlockSpec((in_f, out_f), lambda i: (0, 0)),     # W1: VMEM-resident
            pl.BlockSpec((1, out_f), lambda i: (0, 0)),        # b1: VMEM-resident
            pl.BlockSpec((out_f, out_f), lambda i: (0, 0)),    # W2: VMEM-resident
            pl.BlockSpec((1, out_f), lambda i: (0, 0)),        # b2: VMEM-resident
        ],
        out_specs=(
            pl.BlockSpec((tm, out_f), lambda i: (i, 0)),
            pl.BlockSpec((tm, out_f), lambda i: (i, 0)),
        ),
        compiler_params=pltpu.CompilerParams(
            dimension_semantics=("parallel",),
            vmem_limit_bytes=vmem_limit,
        ),
        cost_estimate=cost,
    )(x, w1, b1, w2, b2)
    return s1, s2


def init_params(key, in_features, out_features):
    """Deterministic init mimicking torch.nn.Linear default (U(-k, k), k=1/sqrt(fan_in))."""
    k1, k2, k3, k4 = jax.random.split(key, 4)
    bound1 = 1.0 / (in_features ** 0.5)
    bound2 = 1.0 / (out_features ** 0.5)
    w1 = jax.random.uniform(k1, (out_features, in_features), jnp.float32,
                            -bound1, bound1)
    b1 = jax.random.uniform(k2, (out_features,), jnp.float32, -bound1, bound1)
    w2 = jax.random.uniform(k3, (out_features, out_features), jnp.float32,
                            -bound2, bound2)
    b2 = jax.random.uniform(k4, (out_features,), jnp.float32, -bound2, bound2)
    return w1, b1, w2, b2


if __name__ == "__main__":
    batch = 8
    in_features = 32
    out_features = 32

    key = jax.random.PRNGKey(0)
    kx, kp = jax.random.split(key)
    x = jax.random.normal(kx, (batch, in_features), jnp.float32)
    w1, b1, w2, b2 = init_params(kp, in_features, out_features)

    # One-time param conversion (transpose only; no padding) outside the forward.
    params = prepare_params(w1, b1, w2, b2)

    s1, s2 = double_stage_regressor(x, params)
    jax.block_until_ready((s1, s2))

    # Reference check in plain JAX (torch.nn.Linear convention).
    h_ref = x @ w1.T + b1
    s1_ref = jax.nn.sigmoid(h_ref)
    s2_ref = h_ref @ w2.T + b2
    assert s1.shape == (batch, out_features) and s2.shape == (batch, out_features)
    assert jnp.allclose(s1, s1_ref, atol=1e-5, rtol=1e-5)
    assert jnp.allclose(s2, s2_ref, atol=1e-5, rtol=1e-5)

    print("KERNEL_OK")
</pallas_src>

<mosaic_0001>
module attributes {stable_mosaic.version = 11 : i64} {
  func.func @_double_stage_kernel(%arg0: i32, %arg1: memref<8x32xf32, #tpu.memory_space<vmem>>, %arg2: memref<32x32xf32, #tpu.memory_space<vmem>>, %arg3: memref<1x32xf32, #tpu.memory_space<vmem>>, %arg4: memref<32x32xf32, #tpu.memory_space<vmem>>, %arg5: memref<1x32xf32, #tpu.memory_space<vmem>>, %arg6: memref<8x32xf32, #tpu.memory_space<vmem>>, %arg7: memref<8x32xf32, #tpu.memory_space<vmem>>) attributes {dimension_semantics = [#tpu.dimension_semantics<parallel>], iteration_bounds = array<i64: 1>, scalar_prefetch = 0 : i64, scratch_operands = 0 : i64, tpu.core_type = #tpu.core_type<tc>, window_params = [{transform_indices = @transform_0, window_bounds = array<i64: 8, 32>}, {pipeline_mode = #tpu.pipeline_mode<synchronous>, transform_indices = @transform_1, window_bounds = array<i64: 32, 32>}, {pipeline_mode = #tpu.pipeline_mode<synchronous>, transform_indices = @transform_2, window_bounds = array<i64: 1, 32>}, {pipeline_mode = #tpu.pipeline_mode<synchronous>, transform_indices = @transform_3, window_bounds = array<i64: 32, 32>}, {pipeline_mode = #tpu.pipeline_mode<synchronous>, transform_indices = @transform_4, window_bounds = array<i64: 1, 32>}, {transform_indices = @transform_5, window_bounds = array<i64: 8, 32>}, {transform_indices = @transform_6, window_bounds = array<i64: 8, 32>}]} {
    %c0 = arith.constant 0 : index
    %c0_0 = arith.constant 0 : index
    %0 = vector.load %arg1[%c0, %c0_0] : memref<8x32xf32, #tpu.memory_space<vmem>>, vector<8x32xf32>
    %c0_1 = arith.constant 0 : index
    %c0_2 = arith.constant 0 : index
    %1 = vector.load %arg2[%c0_1, %c0_2] : memref<32x32xf32, #tpu.memory_space<vmem>>, vector<32x32xf32>
    %cst = arith.constant dense<0.000000e+00> : vector<8x32xf32>
    %2 = tpu.matmul %0, %1, %cst {dimension_numbers = #tpu.dot_dimension_numbers<[1], [0], [0], [1], [0, 0, 1, 1], [], []>} : vector<8x32xf32>, vector<32x32xf32>, vector<8x32xf32> -> vector<8x32xf32>
    %c0_3 = arith.constant 0 : index
    %c0_4 = arith.constant 0 : index
    %3 = vector.load %arg3[%c0_3, %c0_4] : memref<1x32xf32, #tpu.memory_space<vmem>>, vector<1x32xf32>
    %4 = vector.broadcast %3 : vector<1x32xf32> to vector<8x32xf32>
    %5 = arith.addf %2, %4 : vector<8x32xf32>
    %6 = arith.negf %5 : vector<8x32xf32>
    %7 = math.exp %6 : vector<8x32xf32>
    %cst_5 = arith.constant 1.000000e+00 : f32
    %8 = vector.broadcast %cst_5 : f32 to vector<8x32xf32>
    %9 = arith.addf %8, %7 : vector<8x32xf32>
    %10 = arith.divf %8, %9 : vector<8x32xf32>
    %c0_6 = arith.constant 0 : index
    %c0_7 = arith.constant 0 : index
    %11 = vector.load %arg4[%c0_6, %c0_7] : memref<32x32xf32, #tpu.memory_space<vmem>>, vector<32x32xf32>
    %cst_8 = arith.constant dense<0.000000e+00> : vector<8x32xf32>
    %12 = tpu.matmul %5, %11, %cst_8 {dimension_numbers = #tpu.dot_dimension_numbers<[1], [0], [0], [1], [0, 0, 1, 1], [], []>} : vector<8x32xf32>, vector<32x32xf32>, vector<8x32xf32> -> vector<8x32xf32>
    %c0_9 = arith.constant 0 : index
    %c0_10 = arith.constant 0 : index
    %13 = vector.load %arg5[%c0_9, %c0_10] : memref<1x32xf32, #tpu.memory_space<vmem>>, vector<1x32xf32>
    %14 = vector.broadcast %13 : vector<1x32xf32> to vector<8x32xf32>
    %15 = arith.addf %12, %14 : vector<8x32xf32>
    %c0_11 = arith.constant 0 : index
    %c0_12 = arith.constant 0 : index
    %16 = vector.load %arg6[%c0_11, %c0_12] : memref<8x32xf32, #tpu.memory_space<vmem>>, vector<8x32xf32>
    tpu.vector_store %arg6[%c0_11, %c0_12], %10 {strides = array<i32>} : memref<8x32xf32, #tpu.memory_space<vmem>>, vector<8x32xf32>,
    %c0_13 = arith.constant 0 : index
    %c0_14 = arith.constant 0 : index
    %17 = vector.load %arg7[%c0_13, %c0_14] : memref<8x32xf32, #tpu.memory_space<vmem>>, vector<8x32xf32>
    tpu.vector_store %arg7[%c0_13, %c0_14], %15 {strides = array<i32>} : memref<8x32xf32, #tpu.memory_space<vmem>>, vector<8x32xf32>,
    return
  }
  func.func @transform_0(%arg0: i32) -> (i32, i32) {
    %c0_i32 = arith.constant 0 : i32
    %c0_i32_0 = arith.constant 0 : i32
    return %arg0, %c0_i32 : i32, i32
  }
  func.func @transform_1(%arg0: i32) -> (i32, i32) {
    %c0_i32 = arith.constant 0 : i32
    %c0_i32_0 = arith.constant 0 : i32
    %c0_i32_1 = arith.constant 0 : i32
    return %c0_i32, %c0_i32_0 : i32, i32
  }
  func.func @transform_2(%arg0: i32) -> (i32, i32) {
    %c0_i32 = arith.constant 0 : i32
    %c0_i32_0 = arith.constant 0 : i32
    %c0_i32_1 = arith.constant 0 : i32
    return %c0_i32, %c0_i32_0 : i32, i32
  }
  func.func @transform_3(%arg0: i32) -> (i32, i32) {
    %c0_i32 = arith.constant 0 : i32
    %c0_i32_0 = arith.constant 0 : i32
    %c0_i32_1 = arith.constant 0 : i32
    return %c0_i32, %c0_i32_0 : i32, i32
  }
  func.func @transform_4(%arg0: i32) -> (i32, i32) {
    %c0_i32 = arith.constant 0 : i32
    %c0_i32_0 = arith.constant 0 : i32
    %c0_i32_1 = arith.constant 0 : i32
    return %c0_i32, %c0_i32_0 : i32, i32
  }
  func.func @transform_5(%arg0: i32) -> (i32, i32) {
    %c0_i32 = arith.constant 0 : i32
    %c0_i32_0 = arith.constant 0 : i32
    return %arg0, %c0_i32 : i32, i32
  }
  func.func @transform_6(%arg0: i32) -> (i32, i32) {
    %c0_i32 = arith.constant 0 : i32
    %c0_i32_0 = arith.constant 0 : i32
    return %arg0, %c0_i32 : i32, i32
  }
}

</mosaic_0001>

<bundles_post_ra>
// kernel: tpu_custom_call.1
= control target key start
LH: loop header
LB: loop body
LE: loop exit
PB: predicated region body
PF: predicated region fallthrough
CT: control target
= control target key end

     0   :  { %12 = vsyncpa [#allocation3], 0  ;;  %s498_s0 = inlined_call_operand.hbm [shape: f32[8,32], index: 0, kind: input, shape index: {}]   ;;  %s499_s1 = inlined_call_operand.hbm [shape: f32[32,32], index: 1, kind: input, shape index: {}]   ;;  %s500_s2 = inlined_call_operand.vmem [shape: f32[1,32], index: 2, kind: input, shape index: {}]   ;;  %s501_s3 = inlined_call_operand.hbm [shape: f32[32,32], index: 3, kind: input, shape index: {}]   ;;  %s502_s4 = inlined_call_operand.vmem [shape: f32[1,32], index: 4, kind: input, shape index: {}]   ;;  %s503_s5 = inlined_call_operand.hbm [shape: f32[8,32], index: 5, kind: output, shape index: {0}]   ;;  %s504_s6 = inlined_call_operand.hbm [shape: f32[8,32], index: 6, kind: output, shape index: {1}]  }
   0x1   :  { %13 = vsyncpa [#allocation6], 0 }
   0x2   :  { %14 = vsyncpa [#allocation4], 0 }
   0x3   :  { %15 = vsyncpa [#allocation10], 0  ;;  %s429_s21 = smov [#allocation5]  }
   0x4   :  { %s31_s22 = sshll.u32 %s429_s21, 4  ;;  %s32_s22 = int_to_ptr.vmem [resolvable:$true] %s31_s22 }
   0x5   :  { %s329_s23 = scalar_lea.vmem %s32_s22, 512  ;;  %p334_p1 = scmp.lt.s32.totalorder %s32_s22, %s32_s22 }
   0x6   :  { %p330_p0 = scmp.ne.s32.totalorder %s32_s22, %s329_s23  ;;  %p335_p2 = scmp.lt.s32.totalorder %s329_s23, %s329_s23 }
   0x8   :  { %p336_p3 = por %p335_p2, %p334_p1 }
   0xa   :  { %p337_p4 = pnand %p336_p3, %p330_p0 }
   0xc   :  { %340 = shalt.err (!%p337_p4)
}
   0xd   :  { %s430_s24 = smov 128   ;;  %s431_s25 = smov 8  }
   0xe   :  { %37 = dma.hbm_to_vmem [thread:$0]  %s499_s1, 512, %s32_s22, [#allocation6], %s430_s24, %s430_s24, %s431_s25  }
   0xf   :  { %s432_s28 = smov [#allocation2]   ;;  %s433_s30 = smov [#allocation7]  }
  0x10   :  { %s22_s29 = sshll.u32 %s432_s28, 4  ;;  %s45_s7 = sshll.u32 %s433_s30, 4  ;;  %s23_s29 = int_to_ptr.vmem [resolvable:$true] %s22_s29  ;;  %s46_s7 = int_to_ptr.vmem [resolvable:$true] %s45_s7 }
  0x11   :  { %s349_s8 = scalar_lea.vmem %s23_s29, 128  ;;  %p354_p6 = scmp.lt.s32.totalorder %s23_s29, %s23_s29 }
  0x12   :  { %p350_p5 = scmp.ne.s32.totalorder %s23_s29, %s349_s8  ;;  %p355_p7 = scmp.lt.s32.totalorder %s349_s8, %s349_s8 }
  0x14   :  { %p356_p8 = por %p355_p7, %p354_p6 }
  0x16   :  { %p357_p9 = pnand %p356_p8, %p350_p5 }
  0x18   :  { %360 = shalt.err (!%p357_p9)
}
  0x19   :  { %25 = dma.hbm_to_vmem [thread:$0]  %s498_s0, 128, %s23_s29, [#allocation3]  }
  0x1a   :  { %s369_s11 = scalar_lea.vmem %s46_s7, 512  ;;  %p374_p11 = scmp.lt.s32.totalorder %s46_s7, %s46_s7 }
  0x1b   :  { %p370_p10 = scmp.ne.s32.totalorder %s46_s7, %s369_s11  ;;  %p375_p12 = scmp.lt.s32.totalorder %s369_s11, %s369_s11 }
  0x1d   :  { %p376_p13 = por %p375_p12, %p374_p11 }
  0x1f   :  { %p377_p0 = pnand %p376_p13, %p370_p10 }
  0x21   :  { %380 = shalt.err (!%p377_p0)
}
  0x22   :  { %51 = dma.hbm_to_vmem [thread:$0]  %s501_s3, 512, %s46_s7, [#allocation6], %s430_s24, %s430_s24, %s431_s25  }
  0x23   :  { %421 = dma.done.wait [#allocation3], 128  }
  0x24   :  { %422 = vsyncadd [#allocation3], 4294967168 }
  0x25   :  { %423 = dma.done.wait [#allocation6], 1024  }
  0x26   :  { %424 = vsyncadd [#allocation6], 4294966272  ;;  %v434_v0 = vmov 0.0   ;;  %vm435_vm0 = vmmov 0   ;;  %v67_v1 = vld [vmem:[#allocation5 + $0x18] sm:$0xff]  ;;  %v66_v2 = vld [vmem:[#allocation5 + $0x10] sm:$0xff] }
  0x27   :  { %286 = vmatprep.subr.mxu0 %v434_v0  ;;  %294 = vmatprep.mubr.msk.f32.mxu0 %vm435_vm0, %v434_v0  ;;  %v158_v3 = vld [vmem:[#allocation7 + $0x18] sm:$0xff]  ;;  %v65_v4 = vld [vmem:[#allocation5 + $0x8] sm:$0xff]  ;;  %v157_v5 = vld [vmem:[#allocation7 + $0x10] sm:$0xff]  ;;  %vm75_vm1 = vcmask 261120   ;;  %s436_s13 = smov [#allocation8]  }
  0x28   :  { %297 = vmatprep.subr.mxu1 %v434_v0  ;;  %305 = vmatprep.mubr.msk.f32.mxu1 %vm435_vm0, %v434_v0  ;;  %v64_v6 = vld [vmem:[#allocation5] sm:$0xff]  ;;  %v63_v7 = vld [vmem:[#allocation2] sm:$0xff]  ;;  %v156_v8 = vld [vmem:[#allocation7 + $0x8] sm:$0xff]  ;;  %s247_s14 = sshll.u32 %s436_s13, 4  ;;  %s248_s14 = int_to_ptr.vmem [resolvable:$true] %s247_s14 }
  0x29   :  { %287 = vmatpush3.msra.mxu0 %v67_v1  ;;  %298 = vmatpush3.msra.mxu1 %v158_v3  ;;  %v155_v9 = vld [vmem:[#allocation7] sm:$0xff]  ;;  %v271_v10 = vld [vmem:[%s500_s2] ss:$0 sm:$0xff]  ;;  %s381_s15 = scalar_lea.vmem %s248_s14, 128  ;;  %p386_p2 = scmp.lt.s32.totalorder %s248_s14, %s248_s14 }
  0x2a   :  { %288 = vmatprep.subr.mxu0 %v434_v0  ;;  %299 = vmatprep.subr.mxu1 %v434_v0  ;;  %p382_p1 = scmp.ne.s32.totalorder %s248_s14, %s381_s15  ;;  %p387_p3 = scmp.lt.s32.totalorder %s381_s15, %s381_s15 }
  0x2b   :  { %289 = vmatpush3.msra.mxu0 %v66_v2  ;;  %300 = vmatpush3.msra.mxu1 %v157_v5 }
  0x2c   :  { %290 = vmatprep.subr.mxu0 %v434_v0  ;;  %301 = vmatprep.subr.mxu1 %v434_v0  ;;  %p388_p4 = por %p387_p3, %p386_p2 }
  0x2d   :  { %291 = vmatpush3.msra.mxu0 %v65_v4  ;;  %302 = vmatpush3.msra.mxu1 %v156_v8 }
  0x2e   :  { %292 = vmatprep.subr.mxu0 %v434_v0  ;;  %303 = vmatprep.subr.mxu1 %v434_v0  ;;  %p389_p5 = pnand %p388_p4, %p382_p1 }
  0x2f   :  { %293 = vmatpush3.msra.mxu0 %v64_v6  ;;  %304 = vmatpush3.msra.mxu1 %v155_v9 }
  0x30   :  { %295 = vmatmul.mubr.msk.f32.vlgmr.msra.gmra.mxu0 %vm75_vm1, %v63_v7 }
  0xf0   :  { %v145_v11 = vpop.f32.mrf.mxu0 }
  0xf1   :  { %v146_v12 = vadd.f32 %v271_v10, %v145_v11 }
  0xf2   :  { %v296_v13 = vpop.f32.mrf.mxu0 }
  0xf3   :  { %v273_v14 = vmul.f32 -1.442695, %v146_v12  ;;  %306 = vmatmul.mubr.msk.f32.vlgmr.msra.gmra.mxu1 %vm75_vm1, %v146_v12 }
  0xf5   :  { %317 = vpow2.f32 %v273_v14 }
 0x102   :  { %v318_v15 = vpop.eup %317 }
 0x103   :  { %v152_v16 = vadd.f32 1.0, %v318_v15 }
 0x105   :  { %319 = vrcp.f32 %v152_v16 }
 0x112   :  { %v320_v17 = vpop.eup %319 }
 0x113   :  { %239 = vst.msk [vmem:[#allocation8] sm:$0xff] %vm75_vm1, %v320_v17 }
 0x114   :  { %392 = shalt.err (!%p389_p5)
}
 0x115   :  { %250 = dma.vmem_to_hbm [thread:$0]  %s248_s14, 128, %s503_s5, [#allocation4]   ;;  %v274_v18 = vld [vmem:[%s502_s4] ss:$0 sm:$0xff] }
 0x116   :  { %s437_s19 = smov [#allocation9]  }
 0x117   :  { %s257_s20 = sshll.u32 %s437_s19, 4  ;;  %s258_s20 = int_to_ptr.vmem [resolvable:$true] %s257_s20 }
 0x118   :  { %s401_s21 = scalar_lea.vmem %s258_s20, 128  ;;  %p406_p7 = scmp.lt.s32.totalorder %s258_s20, %s258_s20 }
 0x119   :  { %p402_p6 = scmp.ne.s32.totalorder %s258_s20, %s401_s21  ;;  %p407_p8 = scmp.lt.s32.totalorder %s401_s21, %s401_s21 }
 0x11b   :  { %p408_p9 = por %p407_p8, %p406_p7 }
 0x11d   :  { %p409_p10 = pnand %p408_p9, %p402_p6 }
 0x1b3   :  { %v235_v19 = vpop.f32.mrf.mxu1 }
 0x1b4   :  { %v236_v20 = vadd.f32 %v274_v18, %v235_v19 }
 0x1b5   :  { %v307_v21 = vpop.f32.mrf.mxu1 }
 0x1b6   :  { %240 = vst.msk [vmem:[#allocation9] sm:$0xff] %vm75_vm1, %v236_v20 }
 0x1b7   :  { %412 = shalt.err (!%p409_p10)
}
 0x1b8   :  { %260 = dma.vmem_to_hbm [thread:$0]  %s258_s20, 128, %s504_s6, [#allocation10]  }
 0x1b9   :  { %425 = dma.done.wait [#allocation4], 128  }
 0x1ba   :  { %426 = vsyncadd [#allocation4], 4294967168 }
 0x1bb   :  { %427 = dma.done.wait [#allocation10], 128  }
 0x1bc   :  { %428 = vsyncadd [#allocation10], 4294967168 }
 0x1bd   :  { %267 = vsyncpa [#allocation3], 1 }
 0x1be   :  { %268 = vsyncpa [#allocation6], 1 }
 0x1bf   :  { %269 = vsyncpa [#allocation4], 1 }
 0x1c0   :  { %270 = vsyncpa [#allocation10], 1 }

</bundles_post_ra>
